<compile_context>
chip_gen: v7x
topology: tpu7x:2x2x1
jax: 0.10.0
libtpu: 0.0.40
codegen_flags: <defaults>
</compile_context>

<pallas_src>
import jax
import jax.numpy as jnp
from jax import lax
from jax.experimental import pallas as pl
from jax.experimental.pallas import tpu as pltpu


def vlatt_lstm_kernel(x_ref, lstm_ref, att_ref, out_ref, lstm_scratch):
    S, D = x_ref.shape
    H = out_ref.shape[1]

    # ---------------- LSTM recurrence (num_layers=1, batch=1) ----------------
    # Slab layout: rows [0:D) = W_ih^T, [D:D+H) = W_hh^T, [D+H] = b_ih+b_hh,
    # gate columns permuted to [i|f|o|g] and the i|f|o columns pre-scaled by
    # 0.5 (sigmoid-via-tanh identity).  Static, 8-aligned row slices.
    wih = lstm_ref[0:D, :]                      # (D, 4H)
    whh = lstm_ref[D:D + H, :]                  # (H, 4H), loaded once, reused S times
    b   = lstm_ref[D + H:D + H + 1, :]          # (1, 4H)

    # Input projection hoisted out of the loop: one MXU-friendly matmul.
    xw = jnp.dot(x_ref[...], wih, preferred_element_type=jnp.float32) + b  # (S, 4H)

    h = jnp.zeros((1, H), jnp.float32)
    c = jnp.zeros((1, H), jnp.float32)

    for t in range(S):                # static trip count -> fully unrolled
        gates = xw[t:t + 1, :] + jnp.dot(h, whh,
                                         preferred_element_type=jnp.float32)
        # One 4H-lane tanh push; sigmoid(x) = 0.5*tanh(x/2) + 0.5 on the
        # half-scaled i|f|o columns (cheap VPU FMA fixup).
        tg = jnp.tanh(gates)                        # (1, 4H)
        sig = 0.5 * tg[:, 0:3 * H] + 0.5            # i|f|o sigmoids
        i_g = sig[:, 0:H]
        f_g = sig[:, H:2 * H]
        o_g = sig[:, 2 * H:3 * H]
        g_g = tg[:, 3 * H:4 * H]                    # g gate (full-scale tanh)
        c = f_g * c + i_g * g_g
        h = o_g * jnp.tanh(c)                       # second (unavoidable) EUP push
        lstm_scratch[t:t + 1, :] = h                # static masked row store

    h_n = h                                         # lstm_out[-1], register-resident
    lstm_out = lstm_scratch[...]                    # (S, H), single reload

    # ---------------- attention scores (shared across all prefixes) ----------
    # Slab layout: rows [0:H) = W_hw^T, [H:2H) = W_cw^T,
    # [2H] = b_hw+b_cw+att_bias (folded), [2H+1] = w_v2s row.
    whw  = att_ref[0:H, :]                          # (H, H)
    wcw  = att_ref[H:2 * H, :]                      # (H, H)
    attb = att_ref[2 * H:2 * H + 1, :]              # (1, H)
    wv   = att_ref[2 * H + 1:2 * H + 2, :]          # (1, H)

    ctx_all = jnp.dot(h_n, wcw, preferred_element_type=jnp.float32) + attb  # (1, H)
    m = jnp.tanh(jnp.dot(lstm_out, whw,
                         preferred_element_type=jnp.float32) + ctx_all)     # (S, H)
    # e as a (1, S) row: contract H of wv (1,H) against H of m (S,H) (A @ B^T),
    # so no (S,1)->(1,S) cross-lane relayout is needed for the broadcast below.
    # (b_v2s is a constant shift of every logit and cancels in the softmax.)
    e_row = lax.dot_general(wv, m, (((1,), (1,)), ((), ())),
                            preferred_element_type=jnp.float32)             # (1, S)

    # ---------------- per-prefix (causal) softmax + weighted sum --------------
    row = lax.broadcasted_iota(jnp.int32, (S, S), 0)
    col = lax.broadcasted_iota(jnp.int32, (S, S), 1)
    causal = col <= row                                                      # j <= i
    scores = jnp.where(causal, jnp.broadcast_to(e_row, (S, S)), jnp.float32(-1e30))
    s_max = jnp.max(scores, axis=1, keepdims=True)
    p = jnp.where(causal, jnp.exp(scores - s_max), 0.0)
    # Exact divide kept on purpose (see header): off the critical path, and it
    # preserves the strict 1e-5 f32 verification against the reference.
    w = p / jnp.sum(p, axis=1, keepdims=True)                                # (S, S)
    out_ref[...] = jnp.dot(w, lstm_out, preferred_element_type=jnp.float32)


def make_params(key, input_size, hidden_size):
    """PyTorch-layout parameters (as nn.LSTM / nn.Linear store them)."""
    H = hidden_size
    k = jax.random.split(key, 12)
    bl = 1.0 / float(jnp.sqrt(H))

    def u(kk, shape, b):
        return jax.random.uniform(kk, shape, jnp.float32, -b, b)

    return dict(
        # nn.LSTM(input_size, H, 1)
        w_ih=u(k[0], (4 * H, input_size), bl),
        w_hh=u(k[1], (4 * H, H), bl),
        b_ih=u(k[2], (4 * H,), bl),
        b_hh=u(k[3], (4 * H,), bl),
        # nn.Linear(H, H)  (att_hw)
        w_hw=u(k[4], (H, H), bl),
        b_hw=u(k[5], (H,), bl),
        # nn.Linear(H, H)  (att_cw)
        w_cw=u(k[6], (H, H), bl),
        b_cw=u(k[7], (H,), bl),
        # att_bias parameter (zeros in __init__, randomized here for coverage)
        att_bias=u(k[8], (H,), 0.1),
        # nn.Linear(H, 1)  (att_v2s)
        w_v2s=u(k[9], (1, H), bl),
        b_v2s=u(k[10], (1,), bl),
    )


def prepare_params(params):
    """One-time (off the call path) weight massaging + slab packing."""
    H = params["w_hh"].shape[1]
    D = params["w_ih"].shape[1]

    def perm_ifog(w):
        # PyTorch gate order is [i|f|g|o]; regroup rows to [i|f|o|g] so the
        # kernel nonlinearity splits as [3H sigmoid | H tanh].
        return jnp.concatenate([w[0:2 * H], w[3 * H:4 * H], w[2 * H:3 * H]], axis=0)

    # Pre-scale the i|f|o gate columns by 0.5 (exact power-of-2) so the kernel
    # can use sigmoid(x) = 0.5*tanh(x/2) + 0.5 with a single tanh push.
    col_scale = jnp.concatenate([jnp.full((3 * H,), 0.5, jnp.float32),
                                 jnp.ones((H,), jnp.float32)])

    w_ih_t = perm_ifog(params["w_ih"]).T * col_scale                 # (D, 4H)
    w_hh_t = perm_ifog(params["w_hh"]).T * col_scale                 # (H, 4H)
    b_lstm = (perm_ifog(params["b_ih"] + params["b_hh"])
              * col_scale).reshape(1, 4 * H)                         # (1, 4H)
    lstm_slab = jnp.concatenate([w_ih_t, w_hh_t, b_lstm],
                                axis=0).astype(jnp.float32)          # (D+H+1, 4H)

    attb = (params["b_hw"] + params["b_cw"]
            + params["att_bias"]).reshape(1, H)                      # folded biases
    att_slab = jnp.concatenate([params["w_hw"].T, params["w_cw"].T,
                                attb, params["w_v2s"]],
                               axis=0).astype(jnp.float32)           # (2H+2, H)
    return lstm_slab, att_slab


@jax.jit
def vlatt_lstm_forward(x, lstm_slab, att_slab):
    S, B, D = x.shape            # PyTorch LSTM is time-major; h_0 forces B == 1
    assert B == 1, "VLAttLstm's fixed h_0/c_0 require batch == 1"
    H = att_slab.shape[1]
    x2 = x.reshape(S, D).astype(jnp.float32)

    out = pl.pallas_call(
        vlatt_lstm_kernel,
        out_shape=jax.ShapeDtypeStruct((S, H), jnp.float32),
        in_specs=[pl.BlockSpec(memory_space=pltpu.MemorySpace.VMEM)] * 3,
        out_specs=pl.BlockSpec(memory_space=pltpu.MemorySpace.VMEM),
        scratch_shapes=[pltpu.VMEM((S, H), jnp.float32)],   # lstm_out buffer
    )(x2, lstm_slab, att_slab)
    return out.reshape(S, 1, H)                              # matches PyTorch (S, 1, H)


def reference_forward(x, params):
    """Pure-JAX re-implementation mirroring the PyTorch forward loop."""
    S, B, D = x.shape
    H = params["w_hh"].shape[1]
    h = jnp.zeros((B, H), jnp.float32)
    c = jnp.zeros((B, H), jnp.float32)
    outs = []
    for t in range(S):
        gates = (x[t] @ params["w_ih"].T + params["b_ih"]
                 + h @ params["w_hh"].T + params["b_hh"])
        i_g = jax.nn.sigmoid(gates[:, :H])
        f_g = jax.nn.sigmoid(gates[:, H:2 * H])
        g_g = jnp.tanh(gates[:, 2 * H:3 * H])
        o_g = jax.nn.sigmoid(gates[:, 3 * H:])
        c = f_g * c + i_g * g_g
        h = o_g * jnp.tanh(c)
        outs.append(h)
    lstm_out = jnp.stack(outs, axis=0)                             # (S, 1, H)
    h_n = lstm_out[-1:]                                            # (1, 1, H)
    ctx_proj = h_n @ params["w_cw"].T + params["b_cw"]
    zs = []
    for i in range(S):
        y = lstm_out[: i + 1]
        m = jnp.tanh(y @ params["w_hw"].T + params["b_hw"] + ctx_proj + params["att_bias"])
        m = m @ params["w_v2s"].T + params["b_v2s"]                # (i+1, 1, 1)
        s = jax.nn.softmax(m, axis=0)
        zs.append(jnp.sum(y * s, axis=0).reshape(1, 1, H))
    return jnp.concatenate(zs, axis=0)


if __name__ == "__main__":
    key = jax.random.PRNGKey(0)
    k_x, k_p = jax.random.split(key)

    input_size, hidden_size, seq_len, batch = 16, 32, 8, 1
    x = jax.random.normal(k_x, (seq_len, batch, input_size), jnp.float32)
    params = make_params(k_p, input_size, hidden_size)

    # One-time weight prep (hoisted out of the jitted per-call path).
    lstm_slab, att_slab = prepare_params(params)
    lstm_slab, att_slab = jax.block_until_ready((lstm_slab, att_slab))

    out = vlatt_lstm_forward(x, lstm_slab, att_slab)
    out = jax.block_until_ready(out)

    ref = reference_forward(x, params)
    assert out.shape == (seq_len, 1, hidden_size)
    assert jnp.allclose(out, ref, atol=1e-5, rtol=1e-5)

    print("KERNEL_OK")
</pallas_src>

<mosaic_0001>
module attributes {stable_mosaic.version = 11 : i64} {
  func.func @vlatt_lstm_kernel(%arg0: memref<8x16xf32, #tpu.memory_space<vmem>>, %arg1: memref<49x128xf32, #tpu.memory_space<vmem>>, %arg2: memref<66x32xf32, #tpu.memory_space<vmem>>, %arg3: memref<8x32xf32, #tpu.memory_space<vmem>>, %arg4: memref<8x32xf32, #tpu.memory_space<vmem>>) attributes {dimension_semantics = [], scalar_prefetch = 0 : i64, scratch_operands = 1 : i64, tpu.core_type = #tpu.core_type<tc>} {
    %c0 = arith.constant 0 : index
    %c0_0 = arith.constant 0 : index
    %0 = vector.load %arg1[%c0, %c0_0] : memref<49x128xf32, #tpu.memory_space<vmem>>, vector<16x128xf32>
    %c16 = arith.constant 16 : index
    %c0_1 = arith.constant 0 : index
    %1 = vector.load %arg1[%c16, %c0_1] : memref<49x128xf32, #tpu.memory_space<vmem>>, vector<32x128xf32>
    %c48 = arith.constant 48 : index
    %c0_2 = arith.constant 0 : index
    %2 = vector.load %arg1[%c48, %c0_2] : memref<49x128xf32, #tpu.memory_space<vmem>>, vector<1x128xf32>
    %c0_3 = arith.constant 0 : index
    %c0_4 = arith.constant 0 : index
    %3 = vector.load %arg0[%c0_3, %c0_4] : memref<8x16xf32, #tpu.memory_space<vmem>>, vector<8x16xf32>
    %cst = arith.constant dense<0.000000e+00> : vector<8x128xf32>
    %4 = tpu.matmul %3, %0, %cst {dimension_numbers = #tpu.dot_dimension_numbers<[1], [0], [0], [1], [0, 0, 1, 1], [], []>} : vector<8x16xf32>, vector<16x128xf32>, vector<8x128xf32> -> vector<8x128xf32>
    %5 = vector.broadcast %2 : vector<1x128xf32> to vector<8x128xf32>
    %6 = arith.addf %4, %5 : vector<8x128xf32>
    %cst_5 = arith.constant 0.000000e+00 : f32
    %7 = vector.broadcast %cst_5 : f32 to vector<1x32xf32>
    %cst_6 = arith.constant 0.000000e+00 : f32
    %8 = vector.broadcast %cst_6 : f32 to vector<1x32xf32>
    %9 = vector.extract_strided_slice %6 {offsets = [0, 0], sizes = [1, 128], strides = [1, 1]} : vector<8x128xf32> to vector<1x128xf32>
    %cst_7 = arith.constant dense<0.000000e+00> : vector<1x128xf32>
    %10 = tpu.matmul %7, %1, %cst_7 {dimension_numbers = #tpu.dot_dimension_numbers<[1], [0], [0], [1], [0, 0, 1, 1], [], []>} : vector<1x32xf32>, vector<32x128xf32>, vector<1x128xf32> -> vector<1x128xf32>
    %11 = arith.addf %9, %10 : vector<1x128xf32>
    %12 = math.tanh %11 : vector<1x128xf32>
    %13 = vector.extract_strided_slice %12 {offsets = [0, 0], sizes = [1, 96], strides = [1, 1]} : vector<1x128xf32> to vector<1x96xf32>
    %cst_8 = arith.constant 5.000000e-01 : f32
    %14 = vector.broadcast %cst_8 : f32 to vector<1x96xf32>
    %15 = arith.mulf %14, %13 : vector<1x96xf32>
    %cst_9 = arith.constant 5.000000e-01 : f32
    %16 = vector.broadcast %cst_9 : f32 to vector<1x96xf32>
    %17 = arith.addf %15, %16 : vector<1x96xf32>
    %18 = vector.extract_strided_slice %17 {offsets = [0, 0], sizes = [1, 32], strides = [1, 1]} : vector<1x96xf32> to vector<1x32xf32>
    %19 = vector.extract_strided_slice %17 {offsets = [0, 32], sizes = [1, 32], strides = [1, 1]} : vector<1x96xf32> to vector<1x32xf32>
    %20 = vector.extract_strided_slice %17 {offsets = [0, 64], sizes = [1, 32], strides = [1, 1]} : vector<1x96xf32> to vector<1x32xf32>
    %21 = vector.extract_strided_slice %12 {offsets = [0, 96], sizes = [1, 32], strides = [1, 1]} : vector<1x128xf32> to vector<1x32xf32>
    %22 = arith.mulf %19, %8 : vector<1x32xf32>
    %23 = arith.mulf %18, %21 : vector<1x32xf32>
    %24 = arith.addf %22, %23 : vector<1x32xf32>
    %25 = math.tanh %24 : vector<1x32xf32>
    %26 = arith.mulf %20, %25 : vector<1x32xf32>
    %c0_10 = arith.constant 0 : index
    %c0_11 = arith.constant 0 : index
    %27 = vector.load %arg4[%c0_10, %c0_11] : memref<8x32xf32, #tpu.memory_space<vmem>>, vector<1x32xf32>
    tpu.vector_store %arg4[%c0_10, %c0_11], %26 {strides = array<i32>} : memref<8x32xf32, #tpu.memory_space<vmem>>, vector<1x32xf32>,
    %28 = vector.extract_strided_slice %6 {offsets = [1, 0], sizes = [1, 128], strides = [1, 1]} : vector<8x128xf32> to vector<1x128xf32>
    %cst_12 = arith.constant dense<0.000000e+00> : vector<1x128xf32>
    %29 = tpu.matmul %26, %1, %cst_12 {dimension_numbers = #tpu.dot_dimension_numbers<[1], [0], [0], [1], [0, 0, 1, 1], [], []>} : vector<1x32xf32>, vector<32x128xf32>, vector<1x128xf32> -> vector<1x128xf32>
    %30 = arith.addf %28, %29 : vector<1x128xf32>
    %31 = math.tanh %30 : vector<1x128xf32>
    %32 = vector.extract_strided_slice %31 {offsets = [0, 0], sizes = [1, 96], strides = [1, 1]} : vector<1x128xf32> to vector<1x96xf32>
    %cst_13 = arith.constant 5.000000e-01 : f32
    %33 = vector.broadcast %cst_13 : f32 to vector<1x96xf32>
    %34 = arith.mulf %33, %32 : vector<1x96xf32>
    %cst_14 = arith.constant 5.000000e-01 : f32
    %35 = vector.broadcast %cst_14 : f32 to vector<1x96xf32>
    %36 = arith.addf %34, %35 : vector<1x96xf32>
    %37 = vector.extract_strided_slice %36 {offsets = [0, 0], sizes = [1, 32], strides = [1, 1]} : vector<1x96xf32> to vector<1x32xf32>
    %38 = vector.extract_strided_slice %36 {offsets = [0, 32], sizes = [1, 32], strides = [1, 1]} : vector<1x96xf32> to vector<1x32xf32>
    %39 = vector.extract_strided_slice %36 {offsets = [0, 64], sizes = [1, 32], strides = [1, 1]} : vector<1x96xf32> to vector<1x32xf32>
    %40 = vector.extract_strided_slice %31 {offsets = [0, 96], sizes = [1, 32], strides = [1, 1]} : vector<1x128xf32> to vector<1x32xf32>
    %41 = arith.mulf %38, %24 : vector<1x32xf32>
    %42 = arith.mulf %37, %40 : vector<1x32xf32>
    %43 = arith.addf %41, %42 : vector<1x32xf32>
    %44 = math.tanh %43 : vector<1x32xf32>
    %45 = arith.mulf %39, %44 : vector<1x32xf32>
    %c1 = arith.constant 1 : index
    %c0_15 = arith.constant 0 : index
    %46 = vector.load %arg4[%c1, %c0_15] : memref<8x32xf32, #tpu.memory_space<vmem>>, vector<1x32xf32>
    tpu.vector_store %arg4[%c1, %c0_15], %45 {strides = array<i32>} : memref<8x32xf32, #tpu.memory_space<vmem>>, vector<1x32xf32>,
    %47 = vector.extract_strided_slice %6 {offsets = [2, 0], sizes = [1, 128], strides = [1, 1]} : vector<8x128xf32> to vector<1x128xf32>
    %cst_16 = arith.constant dense<0.000000e+00> : vector<1x128xf32>
    %48 = tpu.matmul %45, %1, %cst_16 {dimension_numbers = #tpu.dot_dimension_numbers<[1], [0], [0], [1], [0, 0, 1, 1], [], []>} : vector<1x32xf32>, vector<32x128xf32>, vector<1x128xf32> -> vector<1x128xf32>
    %49 = arith.addf %47, %48 : vector<1x128xf32>
    %50 = math.tanh %49 : vector<1x128xf32>
    %51 = vector.extract_strided_slice %50 {offsets = [0, 0], sizes = [1, 96], strides = [1, 1]} : vector<1x128xf32> to vector<1x96xf32>
    %cst_17 = arith.constant 5.000000e-01 : f32
    %52 = vector.broadcast %cst_17 : f32 to vector<1x96xf32>
    %53 = arith.mulf %52, %51 : vector<1x96xf32>
    %cst_18 = arith.constant 5.000000e-01 : f32
    %54 = vector.broadcast %cst_18 : f32 to vector<1x96xf32>
    %55 = arith.addf %53, %54 : vector<1x96xf32>
    %56 = vector.extract_strided_slice %55 {offsets = [0, 0], sizes = [1, 32], strides = [1, 1]} : vector<1x96xf32> to vector<1x32xf32>
    %57 = vector.extract_strided_slice %55 {offsets = [0, 32], sizes = [1, 32], strides = [1, 1]} : vector<1x96xf32> to vector<1x32xf32>
    %58 = vector.extract_strided_slice %55 {offsets = [0, 64], sizes = [1, 32], strides = [1, 1]} : vector<1x96xf32> to vector<1x32xf32>
    %59 = vector.extract_strided_slice %50 {offsets = [0, 96], sizes = [1, 32], strides = [1, 1]} : vector<1x128xf32> to vector<1x32xf32>
    %60 = arith.mulf %57, %43 : vector<1x32xf32>
    %61 = arith.mulf %56, %59 : vector<1x32xf32>
    %62 = arith.addf %60, %61 : vector<1x32xf32>
    %63 = math.tanh %62 : vector<1x32xf32>
    %64 = arith.mulf %58, %63 : vector<1x32xf32>
    %c2 = arith.constant 2 : index
    %c0_19 = arith.constant 0 : index
    %65 = vector.load %arg4[%c2, %c0_19] : memref<8x32xf32, #tpu.memory_space<vmem>>, vector<1x32xf32>
    tpu.vector_store %arg4[%c2, %c0_19], %64 {strides = array<i32>} : memref<8x32xf32, #tpu.memory_space<vmem>>, vector<1x32xf32>,
    %66 = vector.extract_strided_slice %6 {offsets = [3, 0], sizes = [1, 128], strides = [1, 1]} : vector<8x128xf32> to vector<1x128xf32>
    %cst_20 = arith.constant dense<0.000000e+00> : vector<1x128xf32>
    %67 = tpu.matmul %64, %1, %cst_20 {dimension_numbers = #tpu.dot_dimension_numbers<[1], [0], [0], [1], [0, 0, 1, 1], [], []>} : vector<1x32xf32>, vector<32x128xf32>, vector<1x128xf32> -> vector<1x128xf32>
    %68 = arith.addf %66, %67 : vector<1x128xf32>
    %69 = math.tanh %68 : vector<1x128xf32>
    %70 = vector.extract_strided_slice %69 {offsets = [0, 0], sizes = [1, 96], strides = [1, 1]} : vector<1x128xf32> to vector<1x96xf32>
    %cst_21 = arith.constant 5.000000e-01 : f32
    %71 = vector.broadcast %cst_21 : f32 to vector<1x96xf32>
    %72 = arith.mulf %71, %70 : vector<1x96xf32>
    %cst_22 = arith.constant 5.000000e-01 : f32
    %73 = vector.broadcast %cst_22 : f32 to vector<1x96xf32>
    %74 = arith.addf %72, %73 : vector<1x96xf32>
    %75 = vector.extract_strided_slice %74 {offsets = [0, 0], sizes = [1, 32], strides = [1, 1]} : vector<1x96xf32> to vector<1x32xf32>
    %76 = vector.extract_strided_slice %74 {offsets = [0, 32], sizes = [1, 32], strides = [1, 1]} : vector<1x96xf32> to vector<1x32xf32>
    %77 = vector.extract_strided_slice %74 {offsets = [0, 64], sizes = [1, 32], strides = [1, 1]} : vector<1x96xf32> to vector<1x32xf32>
    %78 = vector.extract_strided_slice %69 {offsets = [0, 96], sizes = [1, 32], strides = [1, 1]} : vector<1x128xf32> to vector<1x32xf32>
    %79 = arith.mulf %76, %62 : vector<1x32xf32>
    %80 = arith.mulf %75, %78 : vector<1x32xf32>
    %81 = arith.addf %79, %80 : vector<1x32xf32>
    %82 = math.tanh %81 : vector<1x32xf32>
    %83 = arith.mulf %77, %82 : vector<1x32xf32>
    %c3 = arith.constant 3 : index
    %c0_23 = arith.constant 0 : index
    %84 = vector.load %arg4[%c3, %c0_23] : memref<8x32xf32, #tpu.memory_space<vmem>>, vector<1x32xf32>
    tpu.vector_store %arg4[%c3, %c0_23], %83 {strides = array<i32>} : memref<8x32xf32, #tpu.memory_space<vmem>>, vector<1x32xf32>,
    %85 = vector.extract_strided_slice %6 {offsets = [4, 0], sizes = [1, 128], strides = [1, 1]} : vector<8x128xf32> to vector<1x128xf32>
    %cst_24 = arith.constant dense<0.000000e+00> : vector<1x128xf32>
    %86 = tpu.matmul %83, %1, %cst_24 {dimension_numbers = #tpu.dot_dimension_numbers<[1], [0], [0], [1], [0, 0, 1, 1], [], []>} : vector<1x32xf32>, vector<32x128xf32>, vector<1x128xf32> -> vector<1x128xf32>
    %87 = arith.addf %85, %86 : vector<1x128xf32>
    %88 = math.tanh %87 : vector<1x128xf32>
    %89 = vector.extract_strided_slice %88 {offsets = [0, 0], sizes = [1, 96], strides = [1, 1]} : vector<1x128xf32> to vector<1x96xf32>
    %cst_25 = arith.constant 5.000000e-01 : f32
    %90 = vector.broadcast %cst_25 : f32 to vector<1x96xf32>
    %91 = arith.mulf %90, %89 : vector<1x96xf32>
    %cst_26 = arith.constant 5.000000e-01 : f32
    %92 = vector.broadcast %cst_26 : f32 to vector<1x96xf32>
    %93 = arith.addf %91, %92 : vector<1x96xf32>
    %94 = vector.extract_strided_slice %93 {offsets = [0, 0], sizes = [1, 32], strides = [1, 1]} : vector<1x96xf32> to vector<1x32xf32>
    %95 = vector.extract_strided_slice %93 {offsets = [0, 32], sizes = [1, 32], strides = [1, 1]} : vector<1x96xf32> to vector<1x32xf32>
    %96 = vector.extract_strided_slice %93 {offsets = [0, 64], sizes = [1, 32], strides = [1, 1]} : vector<1x96xf32> to vector<1x32xf32>
    %97 = vector.extract_strided_slice %88 {offsets = [0, 96], sizes = [1, 32], strides = [1, 1]} : vector<1x128xf32> to vector<1x32xf32>
    %98 = arith.mulf %95, %81 : vector<1x32xf32>
    %99 = arith.mulf %94, %97 : vector<1x32xf32>
    %100 = arith.addf %98, %99 : vector<1x32xf32>
    %101 = math.tanh %100 : vector<1x32xf32>
    %102 = arith.mulf %96, %101 : vector<1x32xf32>
    %c4 = arith.constant 4 : index
    %c0_27 = arith.constant 0 : index
    %103 = vector.load %arg4[%c4, %c0_27] : memref<8x32xf32, #tpu.memory_space<vmem>>, vector<1x32xf32>
    tpu.vector_store %arg4[%c4, %c0_27], %102 {strides = array<i32>} : memref<8x32xf32, #tpu.memory_space<vmem>>, vector<1x32xf32>,
    %104 = vector.extract_strided_slice %6 {offsets = [5, 0], sizes = [1, 128], strides = [1, 1]} : vector<8x128xf32> to vector<1x128xf32>
    %cst_28 = arith.constant dense<0.000000e+00> : vector<1x128xf32>
    %105 = tpu.matmul %102, %1, %cst_28 {dimension_numbers = #tpu.dot_dimension_numbers<[1], [0], [0], [1], [0, 0, 1, 1], [], []>} : vector<1x32xf32>, vector<32x128xf32>, vector<1x128xf32> -> vector<1x128xf32>
    %106 = arith.addf %104, %105 : vector<1x128xf32>
    %107 = math.tanh %106 : vector<1x128xf32>
    %108 = vector.extract_strided_slice %107 {offsets = [0, 0], sizes = [1, 96], strides = [1, 1]} : vector<1x128xf32> to vector<1x96xf32>
    %cst_29 = arith.constant 5.000000e-01 : f32
    %109 = vector.broadcast %cst_29 : f32 to vector<1x96xf32>
    %110 = arith.mulf %109, %108 : vector<1x96xf32>
    %cst_30 = arith.constant 5.000000e-01 : f32
    %111 = vector.broadcast %cst_30 : f32 to vector<1x96xf32>
    %112 = arith.addf %110, %111 : vector<1x96xf32>
    %113 = vector.extract_strided_slice %112 {offsets = [0, 0], sizes = [1, 32], strides = [1, 1]} : vector<1x96xf32> to vector<1x32xf32>
    %114 = vector.extract_strided_slice %112 {offsets = [0, 32], sizes = [1, 32], strides = [1, 1]} : vector<1x96xf32> to vector<1x32xf32>
    %115 = vector.extract_strided_slice %112 {offsets = [0, 64], sizes = [1, 32], strides = [1, 1]} : vector<1x96xf32> to vector<1x32xf32>
    %116 = vector.extract_strided_slice %107 {offsets = [0, 96], sizes = [1, 32], strides = [1, 1]} : vector<1x128xf32> to vector<1x32xf32>
    %117 = arith.mulf %114, %100 : vector<1x32xf32>
    %118 = arith.mulf %113, %116 : vector<1x32xf32>
    %119 = arith.addf %117, %118 : vector<1x32xf32>
    %120 = math.tanh %119 : vector<1x32xf32>
    %121 = arith.mulf %115, %120 : vector<1x32xf32>
    %c5 = arith.constant 5 : index
    %c0_31 = arith.constant 0 : index
    %122 = vector.load %arg4[%c5, %c0_31] : memref<8x32xf32, #tpu.memory_space<vmem>>, vector<1x32xf32>
    tpu.vector_store %arg4[%c5, %c0_31], %121 {strides = array<i32>} : memref<8x32xf32, #tpu.memory_space<vmem>>, vector<1x32xf32>,
    %123 = vector.extract_strided_slice %6 {offsets = [6, 0], sizes = [1, 128], strides = [1, 1]} : vector<8x128xf32> to vector<1x128xf32>
    %cst_32 = arith.constant dense<0.000000e+00> : vector<1x128xf32>
    %124 = tpu.matmul %121, %1, %cst_32 {dimension_numbers = #tpu.dot_dimension_numbers<[1], [0], [0], [1], [0, 0, 1, 1], [], []>} : vector<1x32xf32>, vector<32x128xf32>, vector<1x128xf32> -> vector<1x128xf32>
    %125 = arith.addf %123, %124 : vector<1x128xf32>
    %126 = math.tanh %125 : vector<1x128xf32>
    %127 = vector.extract_strided_slice %126 {offsets = [0, 0], sizes = [1, 96], strides = [1, 1]} : vector<1x128xf32> to vector<1x96xf32>
    %cst_33 = arith.constant 5.000000e-01 : f32
    %128 = vector.broadcast %cst_33 : f32 to vector<1x96xf32>
    %129 = arith.mulf %128, %127 : vector<1x96xf32>
    %cst_34 = arith.constant 5.000000e-01 : f32
    %130 = vector.broadcast %cst_34 : f32 to vector<1x96xf32>
    %131 = arith.addf %129, %130 : vector<1x96xf32>
    %132 = vector.extract_strided_slice %131 {offsets = [0, 0], sizes = [1, 32], strides = [1, 1]} : vector<1x96xf32> to vector<1x32xf32>
    %133 = vector.extract_strided_slice %131 {offsets = [0, 32], sizes = [1, 32], strides = [1, 1]} : vector<1x96xf32> to vector<1x32xf32>
    %134 = vector.extract_strided_slice %131 {offsets = [0, 64], sizes = [1, 32], strides = [1, 1]} : vector<1x96xf32> to vector<1x32xf32>
    %135 = vector.extract_strided_slice %126 {offsets = [0, 96], sizes = [1, 32], strides = [1, 1]} : vector<1x128xf32> to vector<1x32xf32>
    %136 = arith.mulf %133, %119 : vector<1x32xf32>
    %137 = arith.mulf %132, %135 : vector<1x32xf32>
    %138 = arith.addf %136, %137 : vector<1x32xf32>
    %139 = math.tanh %138 : vector<1x32xf32>
    %140 = arith.mulf %134, %139 : vector<1x32xf32>
    %c6 = arith.constant 6 : index
    %c0_35 = arith.constant 0 : index
    %141 = vector.load %arg4[%c6, %c0_35] : memref<8x32xf32, #tpu.memory_space<vmem>>, vector<1x32xf32>
    tpu.vector_store %arg4[%c6, %c0_35], %140 {strides = array<i32>} : memref<8x32xf32, #tpu.memory_space<vmem>>, vector<1x32xf32>,
    %142 = vector.extract_strided_slice %6 {offsets = [7, 0], sizes = [1, 128], strides = [1, 1]} : vector<8x128xf32> to vector<1x128xf32>
    %cst_36 = arith.constant dense<0.000000e+00> : vector<1x128xf32>
    %143 = tpu.matmul %140, %1, %cst_36 {dimension_numbers = #tpu.dot_dimension_numbers<[1], [0], [0], [1], [0, 0, 1, 1], [], []>} : vector<1x32xf32>, vector<32x128xf32>, vector<1x128xf32> -> vector<1x128xf32>
    %144 = arith.addf %142, %143 : vector<1x128xf32>
    %145 = math.tanh %144 : vector<1x128xf32>
    %146 = vector.extract_strided_slice %145 {offsets = [0, 0], sizes = [1, 96], strides = [1, 1]} : vector<1x128xf32> to vector<1x96xf32>
    %cst_37 = arith.constant 5.000000e-01 : f32
    %147 = vector.broadcast %cst_37 : f32 to vector<1x96xf32>
    %148 = arith.mulf %147, %146 : vector<1x96xf32>
    %cst_38 = arith.constant 5.000000e-01 : f32
    %149 = vector.broadcast %cst_38 : f32 to vector<1x96xf32>
    %150 = arith.addf %148, %149 : vector<1x96xf32>
    %151 = vector.extract_strided_slice %150 {offsets = [0, 0], sizes = [1, 32], strides = [1, 1]} : vector<1x96xf32> to vector<1x32xf32>
    %152 = vector.extract_strided_slice %150 {offsets = [0, 32], sizes = [1, 32], strides = [1, 1]} : vector<1x96xf32> to vector<1x32xf32>
    %153 = vector.extract_strided_slice %150 {offsets = [0, 64], sizes = [1, 32], strides = [1, 1]} : vector<1x96xf32> to vector<1x32xf32>
    %154 = vector.extract_strided_slice %145 {offsets = [0, 96], sizes = [1, 32], strides = [1, 1]} : vector<1x128xf32> to vector<1x32xf32>
    %155 = arith.mulf %152, %138 : vector<1x32xf32>
    %156 = arith.mulf %151, %154 : vector<1x32xf32>
    %157 = arith.addf %155, %156 : vector<1x32xf32>
    %158 = math.tanh %157 : vector<1x32xf32>
    %159 = arith.mulf %153, %158 : vector<1x32xf32>
    %c7 = arith.constant 7 : index
    %c0_39 = arith.constant 0 : index
    %160 = vector.load %arg4[%c7, %c0_39] : memref<8x32xf32, #tpu.memory_space<vmem>>, vector<1x32xf32>
    tpu.vector_store %arg4[%c7, %c0_39], %159 {strides = array<i32>} : memref<8x32xf32, #tpu.memory_space<vmem>>, vector<1x32xf32>,
    %c0_40 = arith.constant 0 : index
    %c0_41 = arith.constant 0 : index
    %161 = vector.load %arg4[%c0_40, %c0_41] : memref<8x32xf32, #tpu.memory_space<vmem>>, vector<8x32xf32>
    %c0_42 = arith.constant 0 : index
    %c0_43 = arith.constant 0 : index
    %162 = vector.load %arg2[%c0_42, %c0_43] : memref<66x32xf32, #tpu.memory_space<vmem>>, vector<32x32xf32>
    %c32 = arith.constant 32 : index
    %c0_44 = arith.constant 0 : index
    %163 = vector.load %arg2[%c32, %c0_44] : memref<66x32xf32, #tpu.memory_space<vmem>>, vector<32x32xf32>
    %c64 = arith.constant 64 : index
    %c0_45 = arith.constant 0 : index
    %164 = vector.load %arg2[%c64, %c0_45] : memref<66x32xf32, #tpu.memory_space<vmem>>, vector<1x32xf32>
    %c65 = arith.constant 65 : index
    %c0_46 = arith.constant 0 : index
    %165 = vector.load %arg2[%c65, %c0_46] : memref<66x32xf32, #tpu.memory_space<vmem>>, vector<1x32xf32>
    %cst_47 = arith.constant dense<0.000000e+00> : vector<1x32xf32>
    %166 = tpu.matmul %159, %163, %cst_47 {dimension_numbers = #tpu.dot_dimension_numbers<[1], [0], [0], [1], [0, 0, 1, 1], [], []>} : vector<1x32xf32>, vector<32x32xf32>, vector<1x32xf32> -> vector<1x32xf32>
    %167 = arith.addf %166, %164 : vector<1x32xf32>
    %cst_48 = arith.constant dense<0.000000e+00> : vector<8x32xf32>
    %168 = tpu.matmul %161, %162, %cst_48 {dimension_numbers = #tpu.dot_dimension_numbers<[1], [0], [0], [1], [0, 0, 1, 1], [], []>} : vector<8x32xf32>, vector<32x32xf32>, vector<8x32xf32> -> vector<8x32xf32>
    %169 = vector.broadcast %167 : vector<1x32xf32> to vector<8x32xf32>
    %170 = arith.addf %168, %169 : vector<8x32xf32>
    %171 = math.tanh %170 : vector<8x32xf32>
    %cst_49 = arith.constant dense<0.000000e+00> : vector<1x8xf32>
    %172 = tpu.matmul %165, %171, %cst_49 {dimension_numbers = #tpu.dot_dimension_numbers<[1], [1], [0], [0], [0, 0, 1, 0], [], []>} : vector<1x32xf32>, vector<8x32xf32>, vector<1x8xf32> -> vector<1x8xf32>
    %173 = tpu.iota {dimensions = array<i32: 0>} : vector<8x8xi32>
    %174 = tpu.iota {dimensions = array<i32: 1>} : vector<8x8xi32>
    %175 = arith.cmpi sle, %174, %173 : vector<8x8xi32>
    %176 = vector.shape_cast %172 : vector<1x8xf32> to vector<1x8xf32>
    %177 = vector.broadcast %176 : vector<1x8xf32> to vector<8x8xf32>
    %cst_50 = arith.constant -1.000000e+30 : f32
    %178 = vector.broadcast %cst_50 : f32 to vector<8x8xf32>
    %179 = arith.select %175, %177, %178 : vector<8x8xi1>, vector<8x8xf32>
    %cst_51 = arith.constant dense<0xFF800000> : vector<8xf32>
    %180 = vector.multi_reduction <maximumf>, %179, %cst_51 [1] : vector<8x8xf32> to vector<8xf32>
    %181 = vector.shape_cast %180 : vector<8xf32> to vector<8x1xf32>
    %182 = vector.broadcast %181 : vector<8x1xf32> to vector<8x8xf32>
    %183 = arith.subf %179, %182 : vector<8x8xf32>
    %184 = math.exp %183 : vector<8x8xf32>
    %cst_52 = arith.constant 0.000000e+00 : f32
    %185 = vector.broadcast %cst_52 : f32 to vector<8x8xf32>
    %186 = arith.select %175, %184, %185 : vector<8x8xi1>, vector<8x8xf32>
    %cst_53 = arith.constant dense<0.000000e+00> : vector<8xf32>
    %187 = vector.multi_reduction <add>, %186, %cst_53 [1] : vector<8x8xf32> to vector<8xf32>
    %188 = vector.shape_cast %187 : vector<8xf32> to vector<8x1xf32>
    %189 = vector.broadcast %188 : vector<8x1xf32> to vector<8x8xf32>
    %190 = arith.divf %186, %189 : vector<8x8xf32>
    %cst_54 = arith.constant dense<0.000000e+00> : vector<8x32xf32>
    %191 = tpu.matmul %190, %161, %cst_54 {dimension_numbers = #tpu.dot_dimension_numbers<[1], [0], [0], [1], [0, 0, 1, 1], [], []>} : vector<8x8xf32>, vector<8x32xf32>, vector<8x32xf32> -> vector<8x32xf32>
    %c0_55 = arith.constant 0 : index
    %c0_56 = arith.constant 0 : index
    %192 = vector.load %arg3[%c0_55, %c0_56] : memref<8x32xf32, #tpu.memory_space<vmem>>, vector<8x32xf32>
    tpu.vector_store %arg3[%c0_55, %c0_56], %191 {strides = array<i32>} : memref<8x32xf32, #tpu.memory_space<vmem>>, vector<8x32xf32>,
    return
  }
}

</mosaic_0001>

<bundles_post_ra>
// kernel: vlatt_lstm_forward.1
= control target key start
LH: loop header
LB: loop body
LE: loop exit
PB: predicated region body
PF: predicated region fallthrough
CT: control target
= control target key end

     0   :  { %v1635_v3 = vmov 0.0|0.0   ;;  %vm1636_vm0 = vmmov 0   ;;  %v1637_v8 = vmov 0.0   ;;  %s1877_s0 = inlined_call_operand.vmem [shape: f32[8,16], index: 0, kind: input, shape index: {}]   ;;  %s1878_s1 = inlined_call_operand.vmem [shape: f32[49,128], index: 1, kind: input, shape index: {}]   ;;  %s1879_s2 = inlined_call_operand.vmem [shape: f32[66,32], index: 2, kind: input, shape index: {}]   ;;  %s1880_s3 = inlined_call_operand.hbm [shape: f32[8,32], index: 3, kind: output, shape index: {}]  }
   0x1   :  { %v17_v0 = vld [vmem:[%s1878_s1 + $0x10] sm:$0xff]  ;;  %v18_v1 = vld [vmem:[%s1878_s1 + $0x18] sm:$0xff]  ;;  %v15_v2 = vld [vmem:[%s1878_s1] sm:$0xff]  ;;  %1507 = vmatprep.subr.bf16.mxu1 %v1635_v3  ;;  %1504 = vmatprep.subr.bf16.mxu0 %v1635_v3 }
   0x2   :  { %v1672_v4 = vpack.c.bf16 %v18_v1, %v17_v0  ;;  %v16_v5 = vld [vmem:[%s1878_s1 + $0x8] sm:$0xff]  ;;  %v19_v6 = vld [vmem:[%s1878_s1 + $0x20] sm:$0xff]  ;;  %1381 = vmatprep.mubr.msk.f32.mxu0 %vm1636_vm0, %v1637_v8  ;;  %1392 = vmatprep.mubr.msk.f32.mxu1 %vm1636_vm0, %v1637_v8 }
   0x3   :  { %v1505_v7 = vpack.c.bf16 %v16_v5, %v15_v2  ;;  %v20_v9 = vld [vmem:[%s1878_s1 + $0x28] sm:$0xff] }
   0x4   :  { %8 = vsyncpa [#allocation4], 0  ;;  %1509 = vmatpush3.bf16.msra.mxu1 %v1672_v4  ;;  %v1688_v10 = vpack.c.bf16 %v20_v9, %v19_v6  ;;  %v22_v11 = vld [vmem:[%s1877_s0] sm:$0xff]  ;;  %vm27_vm1 = vcmask 130048   ;;  %v1306_v12 = vld [vmem:[%s1878_s1 + $0x30] ss:$0 sm:$0xff] }
   0x5   :  { %1506 = vmatpush3.bf16.msra.mxu0 %v1505_v7  ;;  %1510 = vmatprep.subr.bf16.mxu1 %v1635_v3  ;;  %s1638_s27 = smov 32   ;;  %s1639_s1 = smov 64   ;;  %vm200_vm2 = vcmask 253952   ;;  %vm101_vm3 = vcmask 261120   ;;  %vm305_vm4 = vcmask 254977   ;;  %vm521_vm5 = vcmask 257027  }
   0x6   :  { %1513 = vmatprep.subr.bf16.mxu0 %v1635_v3  ;;  %vm737_vm6 = vcmask 259077   ;;  %vm413_vm7 = vcmask 256002   ;;  %vm629_vm8 = vcmask 258052   ;;  %vm845_vm9 = vcmask 260102  }
   0x7   :  { %vm953_vm10 = vcmask 261127   ;;  %vm1205_vm12 = vcmask 64512  }
   0x8   :  { %1382 = vmatmul.mubr.msk.f32.vlgmr.msra.gmra.mrb[0].mxu0 %vm27_vm1, %v22_v11  ;;  %1512 = vmatpush3.bf16.msra.mxu1 %v1688_v10 }
   0x9   :  { %1515 = vmatpush3.bf16.msra.mxu0 %v1672_v4  ;;  %1403 = vmatprep.mubr.msk.f32.mxu0 %vm1636_vm0, %v1637_v8 }
   0xa   :  { %1516 = vmatprep.subr.bf16.mxu0 %v1635_v3  ;;  %1519 = vmatprep.subr.bf16.mxu1 %v1635_v3 }
   0xb   :  { %1393 = vmatmul.mubr.f32.vlgmr.msra.gmra.mrb[0].mxu1 %v1637_v8 }
   0xc   :  { %1521 = vmatpush3.bf16.msra.mxu1 %v1672_v4  ;;  %1414 = vmatprep.mubr.msk.f32.mxu1 %vm1636_vm0, %v1637_v8 }
   0xd   :  { %1518 = vmatpush3.bf16.msra.mxu0 %v1688_v10  ;;  %1522 = vmatprep.subr.bf16.mxu1 %v1635_v3 }
   0xe   :  { %1525 = vmatprep.subr.bf16.mxu0 %v1635_v3 }
  0x10   :  { %1524 = vmatpush3.bf16.msra.mxu1 %v1688_v10 }
  0x11   :  { %1531 = vmatprep.subr.bf16.mxu1 %v1635_v3 }
  0xdb   :  { %v97_v13 = vpop.f32.mrb[0].mxu0 }
  0xdc   :  { %v1713_v14 = vadd.f32 %v1306_v12, %v97_v13  ;;  %v1383_v15 = vpop.f32.mrb[1].mxu0 }
  0xde   :  { %v171_v16 = vpop.f32.mrb[0].mxu1 }
  0xdf   :  { %v175_v17 = vadd.f32 %v171_v16, %v1713_v14  ;;  %v1394_v18 = vpop.f32.mrb[1].mxu1 }
  0xe1   :  { %1573 = vtanh.f32 %v175_v17 }
  0xeb   :  { %v1574_v19 = vpop.eup %1573 }
  0xec   :  { %181 = vrot.lane.b32.xlu0 %v1574_v19, %s1638_s27  ;;  %v177_v20 = vmul.f32 0.5, %v1574_v19 }
  0xee   :  { %v178_v21 = vadd.f32 0.5, %v177_v20 }
  0xf0   :  { %v179_v24 = vmul.f32 0.0, %v178_v21 }
 0x15e   :  { %v182_v22 = vpop.permute.xlu0 %181 }
 0x15f   :  { %v184_v23 = vmul.f32 %v182_v22, %v178_v21 }
 0x161   :  { %186 = vrot.lane.b32.xlu0 %v184_v23, %s1638_s27 }
 0x1d3   :  { %v187_v25 = vpop.permute.xlu0 %186 }
 0x1d4   :  { %v189_v26 = vadd.f32 %v187_v25, %v179_v24 }
 0x1d6   :  { %1575 = vtanh.f32 %v189_v26  ;;  %v282_v40 = vrot.slane %v189_v26, 7 }
 0x1e0   :  { %v1576_v27 = vpop.eup %1575 }
 0x1e1   :  { %192 = vrot.lane.b32.xlu1 %v1576_v27, %s1638_s27 }
 0x253   :  { %v193_v28 = vpop.permute.xlu1 %192 }
 0x254   :  { %v195_v29 = vmul.f32 %v193_v28, %v178_v21 }
 0x256   :  { %197 = vrot.lane.b32.xlu1 %v195_v29, %s1639_s1 }
 0x2c8   :  { %v198_v30 = vpop.permute.xlu1 %197 }
 0x2c9   :  { %201 = vst.msk [vmem:[#allocation2] sm:$0x1] %vm200_vm2, %v198_v30  ;;  %1404 = vmatmul.mubr.msk.f32.vlgmr.msra.gmra.mrb[2].mxu0 %vm101_vm3, %v198_v30 }
 0x2ca   :  { %1527 = vmatpush3.bf16.msra.mxu0 %v1672_v4  ;;  %1425 = vmatprep.mubr.msk.f32.mxu0 %vm1636_vm0, %v1637_v8 }
 0x2cb   :  { %1528 = vmatprep.subr.bf16.mxu0 %v1635_v3 }
 0x2ce   :  { %1530 = vmatpush3.bf16.msra.mxu0 %v1688_v10 }
 0x2cf   :  { %1537 = vmatprep.subr.bf16.mxu0 %v1635_v3 }
 0x39c   :  { %v270_v31 = vpop.f32.mrb[2].mxu0 }
 0x39d   :  { %v275_v32 = vrot.slane %v270_v31, 7  ;;  %v1405_v33 = vpop.f32.mrb[3].mxu0 }
 0x39f   :  { %v277_v34 = vadd.f32 %v275_v32, %v1713_v14 }
 0x3a1   :  { %1577 = vtanh.f32 %v277_v34 }
 0x3ab   :  { %v1578_v35 = vpop.eup %1577 }
 0x3ac   :  { %286 = vrot.lane.b32.xlu0 %v1578_v35, %s1638_s27  ;;  %v279_v36 = vmul.f32 0.5, %v1578_v35 }
 0x3ae   :  { %v280_v37 = vadd.f32 0.5, %v279_v36 }
 0x3b0   :  { %v284_v41 = vmul.f32 %v282_v40, %v280_v37 }
 0x41e   :  { %v287_v38 = vpop.permute.xlu0 %286 }
 0x41f   :  { %v289_v39 = vmul.f32 %v287_v38, %v280_v37 }
 0x421   :  { %291 = vrot.lane.b32.xlu1 %v289_v39, %s1638_s27 }
 0x493   :  { %v292_v42 = vpop.permute.xlu1 %291 }
 0x494   :  { %v294_v43 = vadd.f32 %v292_v42, %v284_v41 }
 0x496   :  { %1579 = vtanh.f32 %v294_v43  ;;  %v390_v58 = vrot.slane %v294_v43, 7 }
 0x4a0   :  { %v1580_v44 = vpop.eup %1579 }
 0x4a1   :  { %297 = vrot.lane.b32.xlu0 %v1580_v44, %s1638_s27 }
 0x513   :  { %v298_v45 = vpop.permute.xlu0 %297 }
 0x514   :  { %v1731_v46 = vmul.f32 %v298_v45, %v280_v37 }
 0x516   :  { %v307_v47 = vrot.slane %v1731_v46, 1 }
 0x518   :  { %308 = vrot.lane.b32.xlu1 %v307_v47, %s1639_s1 }
 0x58a   :  { %v309_v48 = vpop.permute.xlu1 %308 }
 0x58b   :  { %1415 = vmatmul.mubr.msk.f32.vlgmr.msra.gmra.mrb[2].mxu1 %vm101_vm3, %v309_v48 }
 0x58c   :  { %1533 = vmatpush3.bf16.msra.mxu1 %v1672_v4  ;;  %1436 = vmatprep.mubr.msk.f32.mxu1 %vm1636_vm0, %v1637_v8 }
 0x58d   :  { %1534 = vmatprep.subr.bf16.mxu1 %v1635_v3 }
 0x590   :  { %1536 = vmatpush3.bf16.msra.mxu1 %v1688_v10 }
 0x591   :  { %1543 = vmatprep.subr.bf16.mxu1 %v1635_v3 }
 0x65e   :  { %v378_v49 = vpop.f32.mrb[2].mxu1 }
 0x65f   :  { %v383_v50 = vrot.slane %v378_v49, 6  ;;  %v1416_v51 = vpop.f32.mrb[3].mxu1 }
 0x661   :  { %v385_v52 = vadd.f32 %v383_v50, %v1713_v14 }
 0x663   :  { %1581 = vtanh.f32 %v385_v52 }
 0x66d   :  { %v1582_v53 = vpop.eup %1581 }
 0x66e   :  { %394 = vrot.lane.b32.xlu0 %v1582_v53, %s1638_s27  ;;  %v387_v54 = vmul.f32 0.5, %v1582_v53 }
 0x670   :  { %v388_v55 = vadd.f32 0.5, %v387_v54 }
 0x672   :  { %v392_v59 = vmul.f32 %v390_v58, %v388_v55 }
 0x6e0   :  { %v395_v56 = vpop.permute.xlu0 %394 }
 0x6e1   :  { %v397_v57 = vmul.f32 %v395_v56, %v388_v55 }
 0x6e3   :  { %399 = vrot.lane.b32.xlu1 %v397_v57, %s1638_s27 }
 0x755   :  { %v400_v60 = vpop.permute.xlu1 %399 }
 0x756   :  { %v402_v61 = vadd.f32 %v400_v60, %v392_v59 }
 0x758   :  { %1583 = vtanh.f32 %v402_v61  ;;  %v498_v17 = vrot.slane %v402_v61, 7 }
 0x762   :  { %v1584_v62 = vpop.eup %1583 }
 0x763   :  { %405 = vrot.lane.b32.xlu0 %v1584_v62, %s1638_s27 }
 0x7d5   :  { %v406_v63 = vpop.permute.xlu0 %405 }
 0x7d6   :  { %v1746_v0 = vmul.f32 %v406_v63, %v388_v55 }
 0x7d8   :  { %v415_v1 = vrot.slane %v1746_v0, 2 }
 0x7da   :  { %416 = vrot.lane.b32.xlu1 %v415_v1, %s1639_s1 }
 0x84c   :  { %v417_v2 = vpop.permute.xlu1 %416 }
 0x84d   :  { %1426 = vmatmul.mubr.msk.f32.vlgmr.msra.gmra.mrb[4].mxu0 %vm101_vm3, %v417_v2 }
 0x84e   :  { %1539 = vmatpush3.bf16.msra.mxu0 %v1672_v4  ;;  %1447 = vmatprep.mubr.msk.f32.mxu0 %vm1636_vm0, %v1637_v8 }
 0x84f   :  { %1540 = vmatprep.subr.bf16.mxu0 %v1635_v3 }
 0x852   :  { %1542 = vmatpush3.bf16.msra.mxu0 %v1688_v10 }
 0x853   :  { %1549 = vmatprep.subr.bf16.mxu0 %v1635_v3 }
 0x920   :  { %v486_v5 = vpop.f32.mrb[4].mxu0 }
 0x921   :  { %v491_v6 = vrot.slane %v486_v5, 5  ;;  %v1427_v7 = vpop.f32.mrb[5].mxu0 }
 0x923   :  { %v493_v9 = vadd.f32 %v491_v6, %v1713_v14 }
 0x925   :  { %1585 = vtanh.f32 %v493_v9 }
 0x92f   :  { %v1586_v11 = vpop.eup %1585 }
 0x930   :  { %502 = vrot.lane.b32.xlu0 %v1586_v11, %s1638_s27  ;;  %v495_v12 = vmul.f32 0.5, %v1586_v11 }
 0x932   :  { %v496_v13 = vadd.f32 0.5, %v495_v12 }
 0x934   :  { %v500_v18 = vmul.f32 %v498_v17, %v496_v13 }
 0x9a2   :  { %v503_v15 = vpop.permute.xlu0 %502 }
 0x9a3   :  { %v505_v16 = vmul.f32 %v503_v15, %v496_v13 }
 0x9a5   :  { %507 = vrot.lane.b32.xlu1 %v505_v16, %s1638_s27 }
 0xa17   :  { %v508_v19 = vpop.permute.xlu1 %507 }
 0xa18   :  { %v510_v20 = vadd.f32 %v508_v19, %v500_v18 }
 0xa1a   :  { %1587 = vtanh.f32 %v510_v20  ;;  %v606_v35 = vrot.slane %v510_v20, 7 }
 0xa24   :  { %v1588_v21 = vpop.eup %1587 }
 0xa25   :  { %513 = vrot.lane.b32.xlu0 %v1588_v21, %s1638_s27 }
 0xa97   :  { %v514_v22 = vpop.permute.xlu0 %513 }
 0xa98   :  { %v1761_v23 = vmul.f32 %v514_v22, %v496_v13 }
 0xa9a   :  { %v523_v24 = vrot.slane %v1761_v23, 3 }
 0xa9c   :  { %524 = vrot.lane.b32.xlu1 %v523_v24, %s1639_s1 }
 0xb0e   :  { %v525_v25 = vpop.permute.xlu1 %524 }
 0xb0f   :  { %1437 = vmatmul.mubr.msk.f32.vlgmr.msra.gmra.mrb[4].mxu1 %vm101_vm3, %v525_v25 }
 0xb10   :  { %1545 = vmatpush3.bf16.msra.mxu1 %v1672_v4  ;;  %1458 = vmatprep.mubr.msk.f32.mxu1 %vm1636_vm0, %v1637_v8 }
 0xb11   :  { %1546 = vmatprep.subr.bf16.mxu1 %v1635_v3 }
 0xb14   :  { %1548 = vmatpush3.bf16.msra.mxu1 %v1688_v10 }
 0xb15   :  { %1555 = vmatprep.subr.bf16.mxu1 %v1635_v3 }
 0xbe2   :  { %v594_v26 = vpop.f32.mrb[4].mxu1 }
 0xbe3   :  { %v599_v27 = vrot.slane %v594_v26, 4  ;;  %v1438_v28 = vpop.f32.mrb[5].mxu1 }
 0xbe5   :  { %v601_v29 = vadd.f32 %v599_v27, %v1713_v14 }
 0xbe7   :  { %1589 = vtanh.f32 %v601_v29 }
 0xbf1   :  { %v1590_v30 = vpop.eup %1589 }
 0xbf2   :  { %610 = vrot.lane.b32.xlu0 %v1590_v30, %s1638_s27  ;;  %v603_v31 = vmul.f32 0.5, %v1590_v30 }
 0xbf4   :  { %v604_v32 = vadd.f32 0.5, %v603_v31 }
 0xbf6   :  { %v608_v36 = vmul.f32 %v606_v35, %v604_v32 }
 0xc64   :  { %v611_v33 = vpop.permute.xlu0 %610 }
 0xc65   :  { %v613_v34 = vmul.f32 %v611_v33, %v604_v32 }
 0xc67   :  { %615 = vrot.lane.b32.xlu1 %v613_v34, %s1638_s27 }
 0xcd9   :  { %v616_v37 = vpop.permute.xlu1 %615 }
 0xcda   :  { %v618_v38 = vadd.f32 %v616_v37, %v608_v36 }
 0xcdc   :  { %1591 = vtanh.f32 %v618_v38  ;;  %v714_v53 = vrot.slane %v618_v38, 7  ;;  %v962_v38 = vld [vmem:[%s1879_s2 + $0x30] sm:$0xff] }
 0xce6   :  { %v1592_v39 = vpop.eup %1591 }
 0xce7   :  { %621 = vrot.lane.b32.xlu0 %v1592_v39, %s1638_s27 }
 0xd59   :  { %v622_v40 = vpop.permute.xlu0 %621 }
 0xd5a   :  { %v1776_v41 = vmul.f32 %v622_v40, %v604_v32  ;;  %v963_v40 = vld [vmem:[%s1879_s2 + $0x38] sm:$0xff] }
 0xd5c   :  { %v631_v42 = vrot.slane %v1776_v41, 4 }
 0xd5e   :  { %632 = vrot.lane.b32.xlu1 %v631_v42, %s1639_s1  ;;  %v1559_v42 = vpack.c.bf16 %v963_v40, %v962_v38 }
 0xdd0   :  { %v633_v43 = vpop.permute.xlu1 %632 }
 0xdd1   :  { %1448 = vmatmul.mubr.msk.f32.vlgmr.msra.gmra.mrb[6].mxu0 %vm101_vm3, %v633_v43  ;;  %v956_v43 = vld [vmem:[%s1879_s2] sm:$0xff] }
 0xdd2   :  { %1551 = vmatpush3.bf16.msra.mxu0 %v1672_v4  ;;  %1469 = vmatprep.mubr.msk.f32.mxu0 %vm1636_vm0, %v1637_v8 }
 0xdd3   :  { %1552 = vmatprep.subr.bf16.mxu0 %v1635_v3 }
 0xdd6   :  { %1554 = vmatpush3.bf16.msra.mxu0 %v1688_v10 }
 0xdd7   :  { %1561 = vmatprep.subr.bf16.mxu0 %v1635_v3 }
 0xea4   :  { %v702_v44 = vpop.f32.mrb[6].mxu0 }
 0xea5   :  { %v707_v45 = vrot.slane %v702_v44, 3  ;;  %v1449_v47 = vpop.f32.mrb[7].mxu0  ;;  %v957_v44 = vld [vmem:[%s1879_s2 + $0x8] sm:$0xff] }
 0xea7   :  { %v709_v48 = vadd.f32 %v707_v45, %v1713_v14  ;;  %v1562_v45 = vpack.c.bf16 %v957_v44, %v956_v43 }
 0xea9   :  { %1593 = vtanh.f32 %v709_v48 }
 0xeb3   :  { %v1594_v49 = vpop.eup %1593 }
 0xeb4   :  { %718 = vrot.lane.b32.xlu0 %v1594_v49, %s1638_s27  ;;  %v711_v50 = vmul.f32 0.5, %v1594_v49 }
 0xeb6   :  { %v712_v4 = vadd.f32 0.5, %v711_v50 }
 0xeb8   :  { %v716_v54 = vmul.f32 %v714_v53, %v712_v4 }
 0xf26   :  { %v719_v51 = vpop.permute.xlu0 %718 }
 0xf27   :  { %v721_v52 = vmul.f32 %v719_v51, %v712_v4 }
 0xf29   :  { %723 = vrot.lane.b32.xlu1 %v721_v52, %s1638_s27 }
 0xf9b   :  { %v724_v10 = vpop.permute.xlu1 %723 }
 0xf9c   :  { %v726_v55 = vadd.f32 %v724_v10, %v716_v54  ;;  %v1041_v10 = vlaneseq }
 0xf9e   :  { %1595 = vtanh.f32 %v726_v55  ;;  %v822_v11 = vrot.slane %v726_v55, 7  ;;  %v1042_v55 = vshrl.u32 %v1041_v10, 7 }
 0xfa8   :  { %v1596_v56 = vpop.eup %1595 }
 0xfa9   :  { %729 = vrot.lane.b32.xlu0 %v1596_v56, %s1638_s27  ;;  %v964_v56 = vld [vmem:[%s1879_s2 + $0x40] sm:$0x1] }
0x101b   :  { %v730_v57 = vpop.permute.xlu0 %729 }
0x101c   :  { %v732_v58 = vmul.f32 %v730_v57, %v712_v4 }
0x101e   :  { %v739_v59 = vrot.slane %v732_v58, 5 }
0x1020   :  { %740 = vrot.lane.b32.xlu1 %v739_v59, %s1639_s1 }
0x1092   :  { %v741_v60 = vpop.permute.xlu1 %740 }
0x1093   :  { %1459 = vmatmul.mubr.msk.f32.vlgmr.msra.gmra.mrb[6].mxu1 %vm101_vm3, %v741_v60  ;;  %v1043_v60 = vsub.s32 0, %v1042_v55 }
0x1094   :  { %1480 = vmatprep.mubr.msk.f32.mxu1 %vm1636_vm0, %v1637_v8 }
0x1166   :  { %v810_v61 = vpop.f32.mrb[6].mxu1 }
0x1167   :  { %v815_v62 = vrot.slane %v810_v61, 2  ;;  %v1460_v63 = vpop.f32.mrb[7].mxu1 }
0x1169   :  { %v817_v1 = vadd.f32 %v815_v62, %v1713_v14 }
0x116b   :  { %1597 = vtanh.f32 %v817_v1 }
0x1175   :  { %v1598_v2 = vpop.eup %1597 }
0x1176   :  { %826 = vrot.lane.b32.xlu0 %v1598_v2, %s1638_s27  ;;  %v819_v5 = vmul.f32 0.5, %v1598_v2 }
0x1178   :  { %v820_v6 = vadd.f32 0.5, %v819_v5  ;;  %v1198_v5 = vand.u32 127, %v1041_v10 }
0x117a   :  { %v824_v12 = vmul.f32 %v822_v11, %v820_v6  ;;  %vm1199_vm11 = vcmp.le.s32.totalorder %v1198_v5, %v1042_v55 }
0x11e8   :  { %v827_v7 = vpop.permute.xlu0 %826 }
0x11e9   :  { %v829_v9 = vmul.f32 %v827_v7, %v820_v6 }
0x11eb   :  { %831 = vrot.lane.b32.xlu1 %v829_v9, %s1638_s27 }
0x125d   :  { %v832_v13 = vpop.permute.xlu1 %831 }
0x125e   :  { %v834_v15 = vadd.f32 %v832_v13, %v824_v12 }
0x1260   :  { %1599 = vtanh.f32 %v834_v15  ;;  %v930_v31 = vrot.slane %v834_v15, 7 }
0x126a   :  { %v1600_v16 = vpop.eup %1599 }
0x126b   :  { %837 = vrot.lane.b32.xlu0 %v1600_v16, %s1638_s27 }
0x12dd   :  { %v838_v17 = vpop.permute.xlu0 %837 }
0x12de   :  { %v840_v18 = vmul.f32 %v838_v17, %v820_v6 }
0x12e0   :  { %v847_v19 = vrot.slane %v840_v18, 6 }
0x12e2   :  { %848 = vrot.lane.b32.xlu1 %v847_v19, %s1639_s1 }
0x1354   :  { %v849_v20 = vpop.permute.xlu1 %848 }
0x1355   :  { %1470 = vmatmul.mubr.msk.f32.vlgmr.msra.gmra.mrb[8].mxu0 %vm101_vm3, %v849_v20 }
0x1356   :  { %1491 = vmatprep.mubr.msk.f32.mxu0 %vm1636_vm0, %v1637_v8  ;;  %1563 = vmatpush3.bf16.msra.mxu0 %v1562_v45 }
0x1357   :  { %1564 = vmatprep.subr.bf16.mxu0 %v1635_v3 }
0x1428   :  { %v918_v21 = vpop.f32.mrb[8].mxu0 }
0x1429   :  { %v923_v22 = vrot.slane %v918_v21, 1  ;;  %v1471_v24 = vpop.f32.mrb[9].mxu0 }
0x142b   :  { %v925_v25 = vadd.f32 %v923_v22, %v1713_v14 }
0x142d   :  { %1601 = vtanh.f32 %v925_v25 }
0x1437   :  { %v1602_v26 = vpop.eup %1601 }
0x1438   :  { %934 = vrot.lane.b32.xlu0 %v1602_v26, %s1638_s27  ;;  %v927_v27 = vmul.f32 0.5, %v1602_v26 }
0x143a   :  { %v928_v28 = vadd.f32 0.5, %v927_v27 }
0x143c   :  { %v932_v14 = vmul.f32 %v930_v31, %v928_v28 }
0x14aa   :  { %v935_v29 = vpop.permute.xlu0 %934 }
0x14ab   :  { %v937_v30 = vmul.f32 %v935_v29, %v928_v28 }
0x14ad   :  { %939 = vrot.lane.b32.xlu1 %v937_v30, %s1638_s27 }
0x14b1   :  { %302 = vrot.lane.b32.xlu1 %v1731_v46, %s1639_s1  ;;  %v960_v46 = vld [vmem:[%s1879_s2 + $0x20] sm:$0xff] }
0x14b5   :  { %518 = vrot.lane.b32.xlu1 %v1761_v23, %s1639_s1  ;;  %v961_v23 = vld [vmem:[%s1879_s2 + $0x28] sm:$0xff] }
0x14b6   :  { %v1556_v39 = vpack.c.bf16 %v961_v23, %v960_v46 }
0x14b8   :  { %1557 = vmatpush3.bf16.msra.mxu1 %v1556_v39 }
0x14b9   :  { %734 = vrot.lane.b32.xlu1 %v732_v58, %s1639_s1  ;;  %1558 = vmatprep.subr.bf16.mxu1 %v1635_v3 }
0x14bc   :  { %1560 = vmatpush3.bf16.msra.mxu1 %v1559_v42 }
0x14bd   :  { %1494 = vmatprep.subr.mxu1 %v1637_v8 }
0x151f   :  { %v940_v32 = vpop.permute.xlu1 %939 }
0x1520   :  { %v942_v33 = vadd.f32 %v940_v32, %v932_v14 }
0x1522   :  { %1603 = vtanh.f32 %v942_v33 }
0x1523   :  { %v303_v34 = vpop.permute.xlu1 %302 }
0x1524   :  { %306 = vst.msk [vmem:[#allocation2] sm:$0x2] %vm305_vm4, %v303_v34 }
0x1527   :  { %v519_v35 = vpop.permute.xlu1 %518 }
0x1528   :  { %522 = vst.msk [vmem:[#allocation2] sm:$0x8] %vm521_vm5, %v519_v35 }
0x152b   :  { %v735_v36 = vpop.permute.xlu1 %734 }
0x152c   :  { %v1604_v37 = vpop.eup %1603  ;;  %738 = vst.msk [vmem:[#allocation2] sm:$0x20] %vm737_vm6, %v735_v36 }
0x152d   :  { %945 = vrot.lane.b32.xlu0 %v1604_v37, %s1638_s27 }
0x1531   :  { %410 = vrot.lane.b32.xlu0 %v1746_v0, %s1639_s1  ;;  %v958_v0 = vld [vmem:[%s1879_s2 + $0x10] sm:$0xff] }
0x1535   :  { %626 = vrot.lane.b32.xlu0 %v1776_v41, %s1639_s1  ;;  %v959_v41 = vld [vmem:[%s1879_s2 + $0x18] sm:$0xff] }
0x1536   :  { %v1565_v47 = vpack.c.bf16 %v959_v41, %v958_v0 }
0x1538   :  { %1566 = vmatpush3.bf16.msra.mxu0 %v1565_v47 }
0x1539   :  { %842 = vrot.lane.b32.xlu0 %v840_v18, %s1639_s1  ;;  %1499 = vmatprep.subr.mxu0 %v1637_v8 }
0x159f   :  { %v946_v48 = vpop.permute.xlu0 %945 }
0x15a0   :  { %v948_v49 = vmul.f32 %v946_v48, %v928_v28 }
0x15a2   :  { %v966_v50 = vrot.slane %v948_v49, 7  ;;  %950 = vrot.lane.b32.xlu1 %v948_v49, %s1639_s1 }
0x15a3   :  { %v411_v4 = vpop.permute.xlu0 %410 }
0x15a4   :  { %414 = vst.msk [vmem:[#allocation2] sm:$0x4] %vm413_vm7, %v411_v4  ;;  %967 = vrot.lane.b32.xlu0 %v966_v50, %s1639_s1 }
0x15a7   :  { %v627_v3 = vpop.permute.xlu0 %626 }
0x15a8   :  { %630 = vst.msk [vmem:[#allocation2] sm:$0x10] %vm629_vm8, %v627_v3 }
0x15ab   :  { %v843_v51 = vpop.permute.xlu0 %842 }
0x15ac   :  { %846 = vst.msk [vmem:[#allocation2] sm:$0x40] %vm845_vm9, %v843_v51 }
0x1614   :  { %v951_v52 = vpop.permute.xlu1 %950 }
0x1615   :  { %954 = vst.msk [vmem:[#allocation2] sm:$0x80] %vm953_vm10, %v951_v52 }
0x1616   :  { %v968_v53 = vpop.permute.xlu0 %967 }
0x1617   :  { %1481 = vmatmul.mubr.msk.f32.vlgmr.msra.gmra.mrb[8].mxu1 %vm101_vm3, %v968_v53 }
0x1618   :  { %1496 = vmatprep.mubr.msk.f32.mxu1 %vm1636_vm0, %v1637_v8 }
0x161c   :  { %v955_v54 = vld [vmem:[#allocation2] sm:$0xff] }
0x161d   :  { %1492 = vmatmul.mubr.msk.f32.vlgmr.msra.gmra.mrb[10].mxu0 %vm101_vm3, %v955_v54 }
0x161e   :  { %1500 = vmatpush3.msra.mxu0 %v955_v54  ;;  %1501 = vmatprep.mubr.msk.f32.mxu0 %vm1636_vm0, %v1637_v8  ;;  %v965_v8 = vld [vmem:[%s1879_s2 + $0x41] sm:$0x1]  ;;  %s1640_s2 = smov [#allocation3]  }
0x161f   :  { %s1298_s21 = sshll.u32 %s1640_s2, 4  ;;  %s1299_s21 = int_to_ptr.vmem [resolvable:$true] %s1298_s21 }
0x1620   :  { %s1611_s22 = scalar_lea.vmem %s1299_s21, 128  ;;  %p1616_p1 = scmp.lt.s32.totalorder %s1299_s21, %s1299_s21 }
0x1621   :  { %p1612_p0 = scmp.ne.s32.totalorder %s1299_s21, %s1611_s22  ;;  %p1617_p2 = scmp.lt.s32.totalorder %s1611_s22, %s1611_s22 }
0x1623   :  { %p1618_p3 = por %p1617_p2, %p1616_p1 }
0x1625   :  { %p1619_p4 = pnand %p1618_p3, %p1612_p0 }
0x16ea   :  { %v1037_v57 = vpop.f32.mrb[8].mxu1 }
0x16eb   :  { %v1038_v58 = vadd.f32 %v1037_v57, %v964_v56  ;;  %v1482_v59 = vpop.f32.mrb[9].mxu1 }
0x16ed   :  { %v1044_v61 = vrot.slane %v1038_v58, %v1043_v60 }
0x16f0   :  { %v1114_v62 = vpop.f32.mrb[10].mxu0 }
0x16f1   :  { %v1115_v63 = vadd.f32 %v1114_v62, %v1044_v61  ;;  %v1493_v1 = vpop.f32.mrb[11].mxu0 }
0x16f3   :  { %1605 = vtanh.f32 %v1115_v63 }
0x16fd   :  { %v1606_v2 = vpop.eup %1605 }
0x16fe   :  { %1495 = vmatpush3.xpose.msk.msra.mxu1 %vm101_vm3, %v1606_v2 }
0x1701   :  { %1497 = vmatmul.mubr.msk.f32.vlgmr.msra.gmra.mrb[10].mxu1 %vm101_vm3, %v965_v8 }
0x17d4   :  { %v1191_v6 = vpop.f32.mrb[10].mxu1 }
0x17d5   :  { %v1203_v7 = vrot.slane %v1191_v6, %v1043_v60  ;;  %v1498_v9 = vpop.f32.mrb[11].mxu1 }
0x17d7   :  { %v1204_v11 = vsel %vm1199_vm11, %v1203_v7, -1e+30 }
0x17d8   :  { %v1206_v12 = vsel %vm1205_vm12, %v1204_v11, -inf }
0x17d9   :  { %1207 = vmax.xlane.f32.xlu1 %v1206_v12 }
0x1866   :  { %v1208_v13 = vpop.xlane.xlu1 %1207 }
0x1867   :  { %v1209_v15 = vsub.f32 %v1204_v11, %v1208_v13 }
0x1869   :  { %v1210_v16 = vmul.f32 1.442695, %v1209_v15 }
0x186b   :  { %1607 = vpow2.f32 %v1210_v16 }
0x1875   :  { %v1608_v17 = vpop.eup %1607 }
0x1876   :  { %v1212_v18 = vsel %vm1199_vm11, %v1608_v17, 0.0 }
0x1877   :  { %v1213_v19 = vsel %vm1205_vm12, %v1212_v18, 0.0 }
0x1878   :  { %1214 = vadd.xlane.f32.xlu0 %v1213_v19 }
0x1905   :  { %v1215_v20 = vpop.xlane.xlu0 %1214 }
0x1906   :  { %1609 = vrcp.f32 %v1215_v20 }
0x1910   :  { %v1610_v21 = vpop.eup %1609 }
0x1911   :  { %v1217_v22 = vmul.f32 %v1610_v21, %v1212_v18 }
0x1913   :  { %1502 = vmatmul.mubr.msk.f32.vlgmr.msra.gmra.mrb[12].mxu0 %vm1205_vm12, %v1217_v22 }
0x19e6   :  { %v1287_v24 = vpop.f32.mrb[12].mxu0 }
0x19e7   :  { %1291 = vst.msk [vmem:[#allocation3] sm:$0xff] %vm101_vm3, %v1287_v24  ;;  %v1503_v25 = vpop.f32.mrb[13].mxu0 }
0x19e8   :  { %1622 = shalt.err (!%p1619_p4)
}
0x19e9   :  { %s1623_s25 = scalar_lea.hbm %s1880_s3, 128 }
0x19ea   :  { %p1624_p5 = scmp.ne.s32.totalorder %s1880_s3, %s1623_s25  ;;  %p1627_p6 = scmp.lt.u32.totalorder %s1623_s25, %s1880_s3 }
0x19ec   :  { %p1629_p7 = pnand %p1627_p6, %p1624_p5 }
0x19ee   :  { %1632 = shalt.err (!%p1629_p7)
}
0x19ef   :  { %1301 = dma.vmem_to_hbm [thread:$0]  %s1299_s21, 128, %s1880_s3, [#allocation4]  }
0x19f0   :  { %1633 = dma.done.wait [#allocation4], 128  }
0x19f1   :  { %1634 = vsyncadd [#allocation4], 4294967168 }
0x19f2   :  { %1305 = vsyncpa [#allocation4], 1 }

</bundles_post_ra>
